<compile_context>
chip_gen: v6e
topology: v6e:2x2x1
jax: 0.10.0
libtpu: 0.0.40
codegen_flags: <defaults>
</compile_context>

<pallas_src>
from functools import partial

import jax
import jax.numpy as jnp
from jax import lax
from jax.experimental import pallas as pl
from jax.experimental.pallas import tpu as pltpu


def _round_up(x, m):
    return -(-x // m) * m


def _tpu_budgets():
    """Returns (per-step block byte budget, vmem_limit_bytes, protect_two_cores)."""
    vmem = None
    try:
        info = pltpu.get_tpu_info()
        vmem = getattr(info, "vmem_capacity_bytes", None)
    except Exception:
        vmem = None
    if vmem is not None and vmem >= 100 * 1024 * 1024:
        # v5e / v6e: 128 MiB physical VMEM, single TensorCore per chip ->
        # bigger blocks, fewer ~0.35us grid steps, explicit (v5e) vmem limit.
        return 8 * 1024 * 1024, 64 * 1024 * 1024, False
    # v7x (or unknown): 64 MiB physical VMEM, 2 TensorCores -> keep blocks
    # modest (double-buffered in+out) and keep >= 2 parallel grid steps.
    return 4 * 1024 * 1024, 32 * 1024 * 1024, True


# ----------------------------------------------------------------------------
# Pallas kernel: one grid step = `rows` waveform rows x one L super-block.
#   wav_ref : (rows, 1, S, Mg)   stride-blocked rows, Mg = n_lt*lt + taps - 1
#   filt_ref: (taps, F, S)       filterbank split into stride-tap slabs
#   out_ref : (rows, F, n_lt*lt) lane-dense TF representation
# ----------------------------------------------------------------------------
def _encoder_conv_kernel(wav_ref, filt_ref, out_ref, *, rows, taps, lt, n_lt):
    # Load the (small) filter tap slabs once; loop invariants below.
    filt = [filt_ref[q] for q in range(taps)]                    # taps x (F, S)

    def row_body(r, carry):
        def tile_body(t, c):
            start = pl.multiple_of(t * lt, 128)
            # Window covering this lane tile plus (taps-1) extra stride blocks.
            win = wav_ref[r, 0, :, pl.ds(start, lt + taps - 1)]  # (S, lt+Q-1)
            acc = jnp.dot(filt[0], win[:, 0:lt],
                          preferred_element_type=jnp.float32)    # (F, lt) f32
            for q in range(1, taps):                             # Q is small
                acc = acc + jnp.dot(filt[q], win[:, q:q + lt],
                                    preferred_element_type=jnp.float32)
            # Single dense (lane-aligned, unmasked) store per tile.
            out_ref[r, :, pl.ds(start, lt)] = acc.astype(out_ref.dtype)
            return c

        return lax.fori_loop(0, n_lt, tile_body, carry)

    lax.fori_loop(0, rows, row_body, 0)


# ----------------------------------------------------------------------------
# Wrapper reproducing multishape_conv1d / Encoder.forward semantics.
# ----------------------------------------------------------------------------
def encoder_forward(waveform, filters, *, stride, padding=0, as_conv1d=True,
                    is_pinv=False, out_dtype=None,
                    _block_budget_bytes=None, _vmem_limit_bytes=None):
    """filters: (n_filters, 1, kernel_size), torch conv1d weight layout."""
    n_filters, _, K = filters.shape
    S = int(stride)
    if S < 1:
        raise ValueError(f"stride must be >= 1, got {stride}")

    if is_pinv:
        # Encoder.get_filters() with is_pinv=True: scaled pseudo-inverse.
        filters = (jnp.linalg.pinv(filters[:, 0, :]).T.reshape(filters.shape)
                   * (S / K))

    out_dtype = jnp.dtype(out_dtype) if out_dtype is not None else jnp.dtype(
        waveform.dtype)

    orig_shape = waveform.shape
    orig_ndim = waveform.ndim
    wav = waveform[None, :] if orig_ndim == 1 else waveform.reshape(
        (-1, orig_shape[-1]))
    N, T = wav.shape

    Tp = T + 2 * padding
    L = (Tp - K) // S + 1                  # conv_time
    if L < 1:
        raise ValueError(
            f"Input too short for conv: time={T}, padding={padding}, kernel={K}")
    Q = -(-K // S)                         # taps grouped into Q stride-blocks
    Kp = Q * S

    budget, vmem_limit, protect_two_cores = _tpu_budgets()
    if _block_budget_bytes is not None:
        budget = int(_block_budget_bytes)
    if _vmem_limit_bytes is not None:
        vmem_limit = int(_vmem_limit_bytes)

    in_bytes = jnp.dtype(waveform.dtype).itemsize
    out_bytes = out_dtype.itemsize

    # --- lane tiling -------------------------------------------------------
    # Pad L to a multiple of 128 -> fully dense lane stores.  Inner lane tile
    # Lt keeps the (F, Lt) f32 accumulator near vreg-file size.
    Lp0 = _round_up(L, 128)
    lt_elems = max(1, (128 * 1024) // (4 * n_filters))      # ~128 KiB f32 acc
    Lt = max(128, (lt_elems // 128) * 128)
    Lt = min(Lt, 1024, Lp0)
    n_t_total = -(-Lp0 // Lt)

    # Lane tiles per grid super-block, sized to the per-step VMEM budget
    # (double-buffered by BlockSpec).  n_g > 1 only for very long rows.
    per_tile = Lt * (in_bytes * S + out_bytes * n_filters)
    fixed = in_bytes * S * (Q - 1)
    G = max(1, int((budget - fixed) // max(per_tile, 1)))
    G = int(min(G, n_t_total))
    n_g = -(-n_t_total // G)
    G = -(-n_t_total // n_g)               # balance super-blocks
    Lg = G * Lt
    Lp = n_g * Lg
    Mg = Lg + Q - 1
    Mp = Lp + Q - 1
    total = Mp * S                         # samples per row actually consumed

    # --- rows per grid step ------------------------------------------------
    row_bytes = in_bytes * S * Mg + out_bytes * n_filters * Lg
    R = max(1, int(budget // max(row_bytes, 1)))
    if protect_two_cores and N > 1:
        R = min(R, -(-N // 2))             # >= 2 grid steps for the 2 TCs (v7x)
    R = int(min(R, N))
    steps = -(-N // R)
    R = -(-N // steps)                     # balance rows across grid steps
    Npad = steps * R

    # --- host-side layout: pad + stride-deinterleave ------------------------
    right = max(0, total - T - padding)
    wav_p = jnp.pad(wav, ((0, Npad - N), (padding, right)))[:, :total]
    # (Npad, Mp, S) -> (Npad, S, Mp): conv-time blocks land on the lane axis.
    wav_sm = jnp.transpose(wav_p.reshape(Npad, Mp, S), (0, 2, 1))
    if n_g == 1:
        wav_tiled = wav_sm[:, None]                              # (Npad,1,S,Mg)
    else:
        # Overlapping L super-blocks (duplicates only Q-1 blocks per tile).
        wav_tiled = jnp.stack(
            [wav_sm[:, :, g * Lg: g * Lg + Mg] for g in range(n_g)],
            axis=1)                                              # (Npad,n_g,S,Mg)

    # Filters (F, 1, K) -> (Q, F, S); zero-padded taps contribute exactly 0.
    filt = jnp.pad(filters[:, 0, :], ((0, 0), (0, Kp - K)))            # (F, Kp)
    filt_q = jnp.transpose(filt.reshape(n_filters, Q, S), (1, 0, 2))   # (Q,F,S)

    kernel = partial(_encoder_conv_kernel, rows=R, taps=Q, lt=Lt, n_lt=G)
    out = pl.pallas_call(
        kernel,
        out_shape=jax.ShapeDtypeStruct((Npad, n_filters, Lp), out_dtype),
        grid_spec=pltpu.PrefetchScalarGridSpec(
            num_scalar_prefetch=0,
            grid=(Npad // R, n_g),
            in_specs=[
                pl.BlockSpec((R, 1, S, Mg), lambda n, g: (n, g, 0, 0)),
                pl.BlockSpec((Q, n_filters, S), lambda n, g: (0, 0, 0)),
            ],
            out_specs=pl.BlockSpec((R, n_filters, Lg), lambda n, g: (n, 0, g)),
        ),
        compiler_params=pltpu.CompilerParams(
            dimension_semantics=("parallel", "parallel"),
            vmem_limit_bytes=vmem_limit,
        ),
    )(wav_tiled, filt_q)                          # (Npad, F, Lp) lane-dense

    spec = out[:N, :, :L]                         # drop row / lane padding

    # Shape routing, matching multishape_conv1d / Encoder docstring.
    if orig_ndim == 1:
        return spec[0]                            # (F, L)
    if orig_ndim == 2:
        return spec                               # (B, F, L)
    if orig_ndim == 3:
        B, C, _ = orig_shape
        if C == 1 and as_conv1d:
            return spec.reshape(B, n_filters, L)  # (B, F, L)
        return spec.reshape(B, C, n_filters, L)   # (B, C, F, L)
    return spec.reshape(orig_shape[:-1] + (n_filters, L))


# ----------------------------------------------------------------------------
# Plain-JAX reference (correctness check only).
# ----------------------------------------------------------------------------
def _ref_conv1d(wav2d, filters, stride, padding):
    # wav2d: (N, T), filters: (F, 1, K) -> (N, F, L)
    x = wav2d[:, None, :]
    return lax.conv_general_dilated(
        x, filters, window_strides=(stride,), padding=[(padding, padding)],
        dimension_numbers=("NCH", "OIH", "NCH"),
        precision=lax.Precision.HIGHEST)


if __name__ == "__main__":
    n_filters, kernel_size = 32, 16
    stride = kernel_size // 2          # 8 (Filterbank default)

    key = jax.random.PRNGKey(0)
    k_filt, k1, k2, k3, k4 = jax.random.split(key, 5)

    # Deterministic "free filterbank" weights: (n_filters, 1, kernel_size).
    filters = (jax.random.normal(k_filt, (n_filters, 1, kernel_size),
                                 dtype=jnp.float32) * 0.1)

    # Case 1: (batch, 1, time), as_conv1d=True -> (batch, freq, conv_time)
    wav_a = jax.random.normal(k1, (2, 1, 128), dtype=jnp.float32)
    spec_a = jax.block_until_ready(encoder_forward(wav_a, filters, stride=stride))
    ref_a = _ref_conv1d(wav_a.reshape(-1, 128), filters, stride, 0)
    assert spec_a.shape == (2, n_filters, 15), spec_a.shape
    assert jnp.allclose(spec_a, ref_a, atol=1e-3, rtol=1e-3)

    # Case 2: (batch, chan, time), chan > 1 -> (batch, chan, freq, conv_time)
    wav_b = jax.random.normal(k2, (2, 3, 64), dtype=jnp.float32)
    spec_b = jax.block_until_ready(encoder_forward(wav_b, filters, stride=stride))
    ref_b = _ref_conv1d(wav_b.reshape(-1, 64), filters, stride, 0)
    assert spec_b.shape == (2, 3, n_filters, 7), spec_b.shape
    assert jnp.allclose(spec_b, ref_b.reshape(2, 3, n_filters, 7),
                        atol=1e-3, rtol=1e-3)

    # Case 3: 1-D (time,) with zero padding -> (freq, conv_time)
    wav_c = jax.random.normal(k3, (200,), dtype=jnp.float32)
    spec_c = jax.block_until_ready(
        encoder_forward(wav_c, filters, stride=stride, padding=3))
    ref_c = _ref_conv1d(wav_c[None], filters, stride, 3)[0]
    assert spec_c.shape == ref_c.shape, (spec_c.shape, ref_c.shape)
    assert jnp.allclose(spec_c, ref_c, atol=1e-3, rtol=1e-3)

    # Case 4: longer single row with a tiny forced block budget -> exercises
    # the L super-block grid axis and the in-kernel lane-tile loop.
    wav_d = jax.random.normal(k4, (1, 1, 32784), dtype=jnp.float32)
    spec_d = jax.block_until_ready(
        encoder_forward(wav_d, filters, stride=stride,
                        _block_budget_bytes=384 * 1024))
    ref_d = _ref_conv1d(wav_d.reshape(-1, 32784), filters, stride, 0)
    assert spec_d.shape == ref_d.shape, (spec_d.shape, ref_d.shape)
    assert jnp.allclose(spec_d, ref_d, atol=1e-3, rtol=1e-3)

    # Case 5: pseudo-inverse filterbank path (is_pinv=True).
    ifilt = (jnp.linalg.pinv(filters[:, 0, :]).T.reshape(filters.shape)
             * (stride / kernel_size))
    spec_e = jax.block_until_ready(
        encoder_forward(wav_a, filters, stride=stride, is_pinv=True))
    ref_e = _ref_conv1d(wav_a.reshape(-1, 128), ifilt, stride, 0)
    assert jnp.allclose(spec_e, ref_e, atol=1e-3, rtol=1e-3)

    print("KERNEL_OK")
</pallas_src>

<mosaic_0001>
module attributes {stable_mosaic.version = 11 : i64} {
  func.func @_encoder_conv_kernel(%arg0: i32, %arg1: i32, %arg2: memref<1x1x8x129xf32, #tpu.memory_space<vmem>>, %arg3: memref<2x32x8xf32, #tpu.memory_space<vmem>>, %arg4: memref<1x32x128xf32, #tpu.memory_space<vmem>>) attributes {dimension_semantics = [#tpu.dimension_semantics<parallel>, #tpu.dimension_semantics<parallel>], iteration_bounds = array<i64: 2, 1>, scalar_prefetch = 0 : i64, scratch_operands = 0 : i64, tpu.core_type = #tpu.core_type<tc>, window_params = [{transform_indices = @transform_0, window_bounds = array<i64: 1, 1, 8, 129>}, {pipeline_mode = #tpu.pipeline_mode<synchronous>, transform_indices = @transform_1, window_bounds = array<i64: 2, 32, 8>}, {transform_indices = @transform_2, window_bounds = array<i64: 1, 32, 128>}]} {
    %c0 = arith.constant 0 : index
    %c0_0 = arith.constant 0 : index
    %c0_1 = arith.constant 0 : index
    %0 = vector.load %arg3[%c0, %c0_0, %c0_1] : memref<2x32x8xf32, #tpu.memory_space<vmem>>, vector<1x32x8xf32>
    %1 = vector.shape_cast %0 : vector<1x32x8xf32> to vector<32x8xf32>
    %c1 = arith.constant 1 : index
    %c0_2 = arith.constant 0 : index
    %c0_3 = arith.constant 0 : index
    %2 = vector.load %arg3[%c1, %c0_2, %c0_3] : memref<2x32x8xf32, #tpu.memory_space<vmem>>, vector<1x32x8xf32>
    %3 = vector.shape_cast %2 : vector<1x32x8xf32> to vector<32x8xf32>
    %c0_i32 = arith.constant 0 : i32
    %c0_i32_4 = arith.constant 0 : i32
    %c128_i32 = arith.constant 128 : i32
    %4 = arith.muli %c0_i32_4, %c128_i32 : i32
    %5 = tpu.assume_multiple %4, 128 : i32
    %6 = arith.index_cast %c0_i32 : i32 to index
    %c0_5 = arith.constant 0 : index
    %c0_6 = arith.constant 0 : index
    %7 = arith.index_cast %5 : i32 to index
    %8 = vector.load %arg2[%6, %c0_5, %c0_6, %7] : memref<1x1x8x129xf32, #tpu.memory_space<vmem>>, vector<1x1x8x129xf32>
    %9 = vector.shape_cast %8 : vector<1x1x8x129xf32> to vector<8x129xf32>
    %10 = vector.extract_strided_slice %9 {offsets = [0, 0], sizes = [8, 128], strides = [1, 1]} : vector<8x129xf32> to vector<8x128xf32>
    %cst = arith.constant dense<0.000000e+00> : vector<32x128xf32>
    %11 = tpu.matmul %1, %10, %cst {dimension_numbers = #tpu.dot_dimension_numbers<[1], [0], [0], [1], [0, 0, 1, 1], [], []>} : vector<32x8xf32>, vector<8x128xf32>, vector<32x128xf32> -> vector<32x128xf32>
    %12 = vector.extract_strided_slice %9 {offsets = [0, 1], sizes = [8, 128], strides = [1, 1]} : vector<8x129xf32> to vector<8x128xf32>
    %cst_7 = arith.constant dense<0.000000e+00> : vector<32x128xf32>
    %13 = tpu.matmul %3, %12, %cst_7 {dimension_numbers = #tpu.dot_dimension_numbers<[1], [0], [0], [1], [0, 0, 1, 1], [], []>} : vector<32x8xf32>, vector<8x128xf32>, vector<32x128xf32> -> vector<32x128xf32>
    %14 = arith.addf %11, %13 : vector<32x128xf32>
    %15 = arith.index_cast %c0_i32 : i32 to index
    %c0_8 = arith.constant 0 : index
    %16 = arith.index_cast %5 : i32 to index
    %17 = vector.load %arg4[%15, %c0_8, %16] : memref<1x32x128xf32, #tpu.memory_space<vmem>>, vector<1x32x128xf32>
    %18 = vector.shape_cast %17 : vector<1x32x128xf32> to vector<32x128xf32>
    %19 = vector.shape_cast %14 : vector<32x128xf32> to vector<1x32x128xf32>
    tpu.vector_store %arg4[%15, %c0_8, %16], %19 {strides = array<i32>} : memref<1x32x128xf32, #tpu.memory_space<vmem>>, vector<1x32x128xf32>,
    %c1_i32 = arith.constant 1 : i32
    %c1_i32_9 = arith.constant 1 : i32
    return
  }
  func.func @transform_0(%arg0: i32, %arg1: i32) -> (i32, i32, i32, i32) {
    %c0_i32 = arith.constant 0 : i32
    %c0_i32_0 = arith.constant 0 : i32
    %c0_i32_1 = arith.constant 0 : i32
    return %arg0, %arg1, %c0_i32, %c0_i32_0 : i32, i32, i32, i32
  }
  func.func @transform_1(%arg0: i32, %arg1: i32) -> (i32, i32, i32) {
    %c0_i32 = arith.constant 0 : i32
    %c0_i32_0 = arith.constant 0 : i32
    %c0_i32_1 = arith.constant 0 : i32
    %c0_i32_2 = arith.constant 0 : i32
    return %c0_i32, %c0_i32_0, %c0_i32_1 : i32, i32, i32
  }
  func.func @transform_2(%arg0: i32, %arg1: i32) -> (i32, i32, i32) {
    %c0_i32 = arith.constant 0 : i32
    %c0_i32_0 = arith.constant 0 : i32
    return %arg0, %c0_i32, %arg1 : i32, i32, i32
  }
}

</mosaic_0001>

<bundles_post_ra>
// kernel: tpu_custom_call.1
= control target key start
LH: loop header
LB: loop body
LE: loop exit
PB: predicated region body
PF: predicated region fallthrough
CT: control target
= control target key end

     0   :  { %7 = vsyncpa [#allocation3], 0  ;;  %s839_s0 = inlined_call_operand.vmem [shape: f32[2,1,8,129], index: 0, kind: input, shape index: {}]   ;;  %s840_s1 = inlined_call_operand.vmem [shape: f32[2,32,8], index: 1, kind: input, shape index: {}]   ;;  %s841_s2 = inlined_call_operand.hbm [shape: f32[2,32,128], index: 2, kind: output, shape index: {}]  }
   0x1   :  { %9 = vsyncpa [#allocation3 + $0x1], 0  ;;  %s693_s9 = smov 0   ;;  %s695_s10 = smov 0  }
   0x2   :  { %s697_s11 = smov 0   ;;  %s699_s12 = smov 0  }
   0x3   :  { %s701_s13 = smov 0   ;;  %s703_s14 = smov 0  }
   0x4 LB: > { %s485_s15 = sadd.s32 4294967295, %s672_s14   ;;  %s486_s16 = sadd.s32 4294967294, %s672_s14   ;;  %s672_s14 = sphi %s703_s14, %s15_s14   ;;  %s668_s13 = sphi %s701_s13, %s848_s13   ;;  %s664_s12 = sphi %s699_s12, %s847_s12   ;;  %s660_s11 = sphi %s697_s11, %s846_s11   ;;  %s656_s10 = sphi %s695_s10, %s845_s10   ;;  %s652_s9 = sphi %s693_s9, %s844_s9  }
   0x5   : > { %s27_s17 = sadd.s32 1, %s668_s13  ;;  %s85_s18 = sadd.s32 1, %s660_s11 }
   0x6   : > { %p29_p0 = scmp.ge.s32.totalorder %s27_s17, 2  ;;  %p95_p1 = scmp.ne.s32.totalorder %s660_s11, %s656_s10 }
   0x7   : > { %p96_p2 = scmp.eq.s32.totalorder %s485_s15, 1  ;;  %p101_p3 = scmp.ne.s32.totalorder %s656_s10, %s652_s9 }
   0x8   : > { %s850_s17 = smov (%p29_p0, %s27_s17), 0  ;;  %p102_p5 = scmp.eq.s32.totalorder %s486_s16, 1 }
   0x9   : > { %p733_p4 = por %p96_p2, %p95_p1  ;;  %s80_s20 = ssub.s32 %s668_s13, %s850_s17 }
   0xa   : > { %p489_p6 = scmp.ge.s32.totalorder %s672_s14, 1  ;;  %p83_p7 = scmp.eq.s32.totalorder %s80_s20, 0 }
   0xb   : > { %p740_p8 = por %p102_p5, %p101_p3  ;;  %p135_p9 = scmp.lt.s32.totalorder %s672_s14, 3 }
   0xc   : > { %s746_s22 = scalar_select %p83_p7, %s660_s11, %s85_s18  }
   0xd   : > { %p136_p10 = pnand %p489_p6, %p135_p9 }
   0xe   : > { %p161_p11 = scmp.lt.s32.totalorder (!%p136_p10), %s664_s12, 1  ;;  %s674_s6 = smov (!%p136_p10), 127  }
   0xf   : > { %139 = sbr.rel (%p136_p10) target bundleno = 362 (0x16a), region = 28  ;;  %s675_s8 = smov (!%p136_p10), [#allocation2]  }
  0x10   : > { %s600_s15 = sshll.u32 (!%p136_p10), %s675_s8, 4  ;;  %s601_s15 = int_to_ptr.vmem [resolvable:$false] %s600_s15 }
  0x11   : > { %s602_s16 = scalar_lea.vmem (!%p136_p10), %s601_s15, 1024 }
  0x14   : > { %v170_v0 = vld [vmem:[%s840_s1] sm:$0xff]  ;;  %vm190_vm0 = vcmask 64512   ;;  %s162_s27 = scalar_select %p161_p11, %s664_s12, 1  ;;  %v171_v3 = vld [vmem:[%s840_s1 + $0x8] sm:$0xff]  ;;  %v172_v4 = vld [vmem:[%s840_s1 + $0x10] sm:$0xff]  ;;  %vm187_vm1 = vcmask 1039360  }
  0x15   : > { %532 = vmatprep.mubr.msk.f32.mxu1 %vm190_vm0, %v170_v0  ;;  %v493_v1 = vld [vmem:[%s840_s1 + $0x20] sm:$0xff]  ;;  %v173_v6 = vld [vmem:[%s840_s1 + $0x18] sm:$0xff]  ;;  %v494_v10 = vld [vmem:[%s840_s1 + $0x28] sm:$0xff] }
  0x16   : > { %524 = vmatprep.mubr.msk.f32.mxu0 %vm190_vm0, %v493_v1  ;;  %s510_s28 = sshll.u32 %s162_s27, 4  ;;  %v495_v11 = vld [vmem:[%s840_s1 + $0x30] sm:$0xff]  ;;  %v496_v12 = vld [vmem:[%s840_s1 + $0x38] sm:$0xff]  ;;  %s158_s27 = sand.u32 1, %s656_s10  }
  0x17   : > { %s169_s3 = scalar_lea.vmem %s839_s0, %s510_s28  ;;  %s490_s28 = sshll.u32 %s158_s27, 5 }
  0x18   : > { %v179_v2 = vld [vmem:[%s169_s3] sm:$0xff]  ;;  %v180_v5 = vld [vmem:[%s169_s3 + $0x8] sm:$0xff]  ;;  %s160_s29 = scalar_lea.vmem [#allocation2], %s490_s28  ;;  %s511_s3 = sshll.u32 %s664_s12, 9 }
  0x19   : > { %183 = vrot.lane.b32.xlu0 %v179_v2, %s674_s6  ;;  %530 = vmatprep.subr.mxu1 %v179_v2  ;;  %s404_s30 = sshll.u32 %s160_s29, 4  ;;  %s794_s7 = scalar_lea.sflag [#allocation3], %s158_s27  ;;  %s787_s30 = int_to_ptr.vmem [resolvable:$true] %s404_s30 }
  0x1a   : > { %531 = vmatpush3.msra.mxu1 %v179_v2  ;;  %s596_s12 = scalar_lea.vmem %s787_s30, 512  ;;  %p603_p1 = scmp.lt.s32.totalorder %s787_s30, %s601_s15 }
  0x1b   : > { %533 = vmatmul.mubr.msk.f32.vlgmr.msra.gmra.mxu1 %vm190_vm0, %v171_v3  ;;  %p597_p12 = scmp.ne.s32.totalorder %s787_s30, %s596_s12  ;;  %p604_p2 = scmp.lt.s32.totalorder %s602_s16, %s596_s12 }
  0x1c   : > { %535 = vmatprep.mubr.msk.f32.mxu1 %vm190_vm0, %v172_v4 }
  0x1d   : > { %185 = vrot.lane.b32.xlu0 %v180_v5, %s674_s6  ;;  %s792_s6 = scalar_lea.hbm %s841_s2, %s511_s3  ;;  %p598_p13 = pnand %p597_p12, %p733_p4 }
  0x1e   : > { %p605_p3 = por %p604_p2, %p603_p1 }
  0x1f   : > { %536 = vmatmul.mubr.msk.f32.gmra.mxu1 %vm190_vm0, %v173_v6  ;;  %p599_p0 = pneg %p598_p13 }
  0x21   : > { %p606_p5 = pnand %p605_p3, %p599_p0 }
  0x8b   : > { %v184_v7 = vpop.permute.xlu0 %183 }
  0x8f   : > { %v186_v8 = vpop.permute.xlu0 %185 }
  0x90   : > { %v188_v9 = vsel %vm187_vm1, %v184_v7, %v186_v8 }
  0x91   : > { %522 = vmatprep.subr.mxu0 %v188_v9 }
  0x92   : > { %523 = vmatpush3.msra.mxu0 %v188_v9 }
  0x93   : > { %525 = vmatmul.mubr.msk.f32.vlgmr.msra.gmra.mxu0 %vm190_vm0, %v494_v10 }
  0x94   : > { %527 = vmatprep.mubr.msk.f32.mxu0 %vm190_vm0, %v495_v11 }
  0x97   : > { %528 = vmatmul.mubr.msk.f32.gmra.mxu0 %vm190_vm0, %v496_v12 }
  0xdb   : > { %v534_v13 = vpop.f32.mrf.mxu1 }
  0xdd   : > { %v366_v14 = vpop.f32.mrf.mxu1 }
  0xdf   : > { %v537_v18 = vpop.f32.mrf.mxu1 }
  0xe1   : > { %v376_v22 = vpop.f32.mrf.mxu1 }
 0x153   : > { %v526_v15 = vpop.f32.mrf.mxu0 }
 0x154   : > { %v372_v16 = vadd.f32 %v534_v13, %v526_v15 }
 0x155   : > { %v269_v17 = vpop.f32.mrf.mxu0 }
 0x156   : > { %386 = vst [vmem:[%s160_s29 + $0x8] sm:$0xff] %v372_v16  ;;  %v367_v19 = vadd.f32 %v366_v14, %v269_v17 }
 0x157   : > { %v529_v20 = vpop.f32.mrf.mxu0 }
 0x158   : > { %385 = vst [vmem:[%s160_s29] sm:$0xff] %v367_v19  ;;  %v382_v21 = vadd.f32 %v537_v18, %v529_v20 }
 0x159   : > { %v279_v23 = vpop.f32.mrf.mxu0 }
 0x15a   : > { %388 = vst [vmem:[%s160_s29 + $0x18] sm:$0xff] %v382_v21  ;;  %v377_v24 = vadd.f32 %v376_v22, %v279_v23 }
 0x15c   : > { %387 = vst [vmem:[%s160_s29 + $0x10] sm:$0xff] %v377_v24 }
 0x15d   : > { %609 = shalt.err (!%p606_p5)
}
 0x15e   : > { %s610_s18 = scalar_lea.hbm %s792_s6, 512  ;;  %s614_s24 = scalar_lea.hbm %s841_s2, 1024 }
 0x15f   : > { %p611_p6 = scmp.ne.s32.totalorder %s792_s6, %s610_s18  ;;  %p615_p10 = scmp.lt.s32.totalorder %s792_s6, %s841_s2 }
 0x160   : > { %p616_p11 = scmp.lt.s32.totalorder %s614_s24, %s610_s18 }
 0x161   : > { %p612_p7 = pnand %p611_p6, %p733_p4 }
 0x162   : > { %p617_p12 = por %p616_p11, %p615_p10 }
 0x163   : > { %p613_p9 = pneg %p612_p7 }
 0x165   : > { %p618_p13 = pnand %p617_p12, %p613_p9 }
 0x167   : > { %621 = shalt.err (!%p618_p13)
}
 0x168   : > { %s676_s27 = smov 128   ;;  %s677_s28 = smov 8  }
 0x169   : > { %538 = dma.vmem_to_hbm [thread:$0]  (%p733_p4), %s787_s30, 512, %s792_s6, %s794_s7, %s676_s27, %s676_s27, %s677_s28  }
 0x16a PF: > { %p544_p0 = scmp.ge.s32.totalorder %s672_s14, 2  ;;  %s419_s29 = sand.u32 1, %s652_s9  }
 0x16b   : > { %s420_s3 = scalar_lea.sflag [#allocation3], %s419_s29 }
 0x16c   : > { %p541_p1 = pnand %p544_p0, %p740_p8 }
 0x16e   : > { %p542_p2 = pneg %p541_p1 }
 0x170   : > { %647 = dma.done.wait (%p542_p2), %s420_s3, 512  }
 0x171   : > { %649 = vsyncadd (%p542_p2), %s420_s3, 4294966784  ;;  %s15_s14 = sadd.s32 1, %s672_s14   ;;  %s844_s9 = smov %s656_s10 }
 0x172   : > { %p12_p3 = scmp.ge.s32.totalorder %s15_s14, 4   ;;  %s845_s10 = smov %s660_s11 }
 0x173   : > { %s846_s11 = smov %s746_s22  ;;  %s847_s12 = smov %s668_s13 }
 0x174   : > { %s848_s13 = smov %s850_s17  ;;  %14 = sbr.rel (!%p12_p3) target bundleno = 4 (0x4), region = 64 }
 0x179   :  { %425 = vsyncpa [#allocation3], 1 }
 0x17a   :  { %427 = vsyncpa [#allocation3 + $0x1], 1 }

</bundles_post_ra>
